<compile_context>
chip_gen: v6e
topology: v6e:2x2x1
jax: 0.10.0
libtpu: 0.0.40
codegen_flags: <defaults>
</compile_context>

<pallas_src>
import math

import jax
import jax.numpy as jnp
from jax.experimental import pallas as pl
from jax.experimental.pallas import tpu as pltpu


_VMEM_LIMIT = 64 * 1024 * 1024  # <= physical VMEM on v5e/v6e/v7x


def _largest_divisor_leq(n, cap):
    best = 1
    for d in range(1, n + 1):
        if n % d == 0 and d <= cap:
            best = d
    return best


def _chan_tile(c):
    # Channel tiles for the MXU contraction: multiples of 128 keep the MXU K/N
    # dims full (256 preferred on v6e/v7x); otherwise use the full extent.
    if c % 256 == 0:
        return 256
    if c % 128 == 0:
        return 128
    return c


# ---------------------------------------------------------------------------
# Kernel 1: nearest-2x upsample only (use_conv=False) -- exact in x.dtype.
# ---------------------------------------------------------------------------
def _upsample_kernel(rw_ref, x_ref, o_ref):
    # rw_ref: (W, 4W) 0/1 selection matrix (host-built, resident across steps)
    # x_ref : (1, ct, H, W)        o_ref: (1, ct, H, 4W)
    _, ct, H, W = x_ref.shape
    xf = x_ref[0].reshape(ct * H, W)                      # batch channels into M
    a = jnp.dot(xf, rw_ref[...], preferred_element_type=jnp.float32)
    o_ref[0] = a.reshape(ct, H, 4 * W).astype(o_ref.dtype)


def upsample2x(x):
    N, C, H, W = x.shape
    # RW2[w, j] = 1 iff w == (j % 2W)//2 : one matmul does the 2x width
    # expansion AND packs the doubled row twice into the (dy, 2W) lane layout,
    # so row h of the (H, 4W) output is exactly rows 2h and 2h+1 of (2H, 2W).
    j = jnp.arange(4 * W)
    src = (j % (2 * W)) // 2
    rw2 = (jnp.arange(W)[:, None] == src[None, :]).astype(x.dtype)

    per_chan = H * 4 * W * jnp.dtype(x.dtype).itemsize
    ct = _largest_divisor_leq(C, max(1, (2 * 1024 * 1024) // per_chan))

    out = pl.pallas_call(
        _upsample_kernel,
        out_shape=jax.ShapeDtypeStruct((N, C, H, 4 * W), x.dtype),
        grid=(N, C // ct),
        in_specs=[
            pl.BlockSpec((W, 4 * W), lambda n, c: (0, 0)),
            pl.BlockSpec((1, ct, H, W), lambda n, c: (n, c, 0, 0)),
        ],
        out_specs=pl.BlockSpec((1, ct, H, 4 * W), lambda n, c: (n, c, 0, 0)),
        compiler_params=pltpu.CompilerParams(
            dimension_semantics=("parallel", "parallel"),
            vmem_limit_bytes=_VMEM_LIMIT),
    )(rw2, x)
    return out.reshape(N, C, 2 * H, 2 * W)   # contiguous -> free reshape


# ---------------------------------------------------------------------------
# Kernel 2: fused nearest-2x upsample + 3x3 conv (padding=1, zeros)
#           via the sub-pixel (four 2x2 convs) identity.
# ---------------------------------------------------------------------------
def _subpixel_weights(weight):
    # weight: (Co, Ci, 3, 3) -> effective 2x2 sub-pixel weights (16, Ci, Co).
    # Tap index t = ((dy*2 + dx)*2 + i)*2 + j uses the input slab at offset
    # (dy+i, dx+j) of the 1-padded NHWC input.
    sel = jnp.array([[[1., 0., 0.], [0., 1., 1.]],     # dy(dx)=0: {-1}, {0}
                     [[1., 1., 0.], [0., 0., 1.]]],    # dy(dx)=1: {0}, {+1}
                    dtype=jnp.float32)
    w32 = weight.astype(jnp.float32)
    weff = jnp.einsum('aiy,bjx,ocyx->abijco', sel, sel, w32)
    co, ci = weight.shape[0], weight.shape[1]
    return weff.reshape(16, ci, co)


def _upsample_conv_kernel(xp_ref, w_ref, b_ref, o_ref, acc_ref):
    # xp_ref : (1, H+2, W+2, CiC)  padded NHWC input chunk (compute dtype)
    # w_ref  : (16, CiC, CoT)      sub-pixel weights (compute dtype)
    # b_ref  : (1, CoT)            bias (f32)
    # o_ref  : (1, 4, H, W, CoT)   parity-major output block
    # acc_ref: (4, H, W, CoT)      f32 accumulator, resident across the Ci axis
    ci_idx = pl.program_id(2)

    @pl.when(ci_idx == 0)
    def _init():
        acc_ref[...] = jnp.zeros_like(acc_ref)

    _, hp2, wp2, cic = xp_ref.shape
    H, W = hp2 - 2, wp2 - 2
    cot = o_ref.shape[-1]

    xp = xp_ref[0]                                       # (H+2, W+2, CiC)
    # 9 distinct shifted input slabs (channels in lanes), built once per step.
    slabs = [[xp[oh:oh + H, ow:ow + W, :].reshape(H * W, cic)
              for ow in range(3)] for oh in range(3)]

    # 16 MXU matmuls: per parity (dy,dx), a 2x2 conv at input resolution.
    for dy in range(2):
        for dx in range(2):
            p = dy * 2 + dx
            part = None
            for i in range(2):
                for j in range(2):
                    t = (p * 2 + i) * 2 + j
                    m = jnp.dot(slabs[dy + i][dx + j], w_ref[t],
                                preferred_element_type=jnp.float32)
                    part = m if part is None else part + m
            acc_ref[p] += part.reshape(H, W, cot)

    @pl.when(ci_idx == pl.num_programs(2) - 1)
    def _fin():
        bias = b_ref[0].astype(jnp.float32)              # (CoT,)
        o_ref[0] = (acc_ref[...] + bias[None, None, None, :]).astype(o_ref.dtype)


def upsample2x_conv3x3(x, weight, bias, *, compute_dtype=jnp.bfloat16):
    N, Ci, H, W = x.shape
    Co = weight.shape[0]
    assert weight.shape == (Co, Ci, 3, 3)

    # Layout plumbing (one fused XLA pass each way): NCHW -> 1-padded NHWC in
    # the MXU compute dtype; the kernel output comes back parity-major and is
    # interleaved + transposed back to NCHW by a single XLA transpose.
    xp = jnp.pad(jnp.transpose(x, (0, 2, 3, 1)),
                 ((0, 0), (1, 1), (1, 1), (0, 0))).astype(compute_dtype)
    weff = _subpixel_weights(weight).astype(compute_dtype)   # (16, Ci, Co)
    b2 = bias.astype(jnp.float32).reshape(1, Co)

    cic = _chan_tile(Ci)
    cot = _chan_tile(Co)
    grid = (N, Co // cot, Ci // cic)   # Ci reduction last ("arbitrary")

    out5 = pl.pallas_call(
        _upsample_conv_kernel,
        out_shape=jax.ShapeDtypeStruct((N, 4, H, W, Co), x.dtype),
        grid=grid,
        in_specs=[
            pl.BlockSpec((1, H + 2, W + 2, cic), lambda n, co, ci: (n, 0, 0, ci)),
            pl.BlockSpec((16, cic, cot), lambda n, co, ci: (0, ci, co)),
            pl.BlockSpec((1, cot), lambda n, co, ci: (0, co)),
        ],
        out_specs=pl.BlockSpec((1, 4, H, W, cot),
                               lambda n, co, ci: (n, 0, 0, 0, co)),
        scratch_shapes=[pltpu.VMEM((4, H, W, cot), jnp.float32)],
        compiler_params=pltpu.CompilerParams(
            dimension_semantics=("parallel", "parallel", "arbitrary"),
            vmem_limit_bytes=_VMEM_LIMIT),
    )(xp, weff, b2)

    # (N, dy*2+dx, H, W, Co) -> (N, Co, H, dy, W, dx) -> (N, Co, 2H, 2W)
    out = out5.reshape(N, 2, 2, H, W, Co)
    out = jnp.transpose(out, (0, 5, 3, 1, 4, 2)).reshape(N, Co, 2 * H, 2 * W)
    return out


# ---------------------------------------------------------------------------
# Module wrapper (matches the PyTorch Upsample interface / semantics, dims=2)
# ---------------------------------------------------------------------------
class Upsample:
    def __init__(self, channels, use_conv, dims=2, out_channels=None,
                 padding_mode='zeros', padding=1, *, key=None,
                 dtype=jnp.float32, compute_dtype=jnp.bfloat16):
        assert dims == 2, "TODO(synk): dims=1 / dims=3 variants not implemented"
        assert padding_mode == 'zeros', "TODO(synk): only zero padding implemented"
        assert padding == 1, "TODO(synk): only padding=1 implemented"
        self.channels = channels
        self.out_channels = out_channels or channels
        self.use_conv = use_conv
        self.compute_dtype = compute_dtype
        if use_conv:
            if key is None:
                key = jax.random.PRNGKey(0)
            k1, k2 = jax.random.split(key)
            bound = 1.0 / math.sqrt(channels * 9)
            self.weight = jax.random.uniform(
                k1, (self.out_channels, channels, 3, 3), dtype, -bound, bound)
            self.bias = jax.random.uniform(
                k2, (self.out_channels,), dtype, -bound, bound)

    def __call__(self, x):
        assert x.shape[1] == self.channels
        if self.use_conv:
            return upsample2x_conv3x3(x, self.weight, self.bias,
                                      compute_dtype=self.compute_dtype)
        return upsample2x(x)


# ---------------------------------------------------------------------------
# Pure-JAX reference (mirrors F.interpolate(nearest, x2) [+ Conv2d(3, pad=1)])
# ---------------------------------------------------------------------------
def _upsample_ref(x, weight=None, bias=None):
    u = jnp.repeat(jnp.repeat(x, 2, axis=2), 2, axis=3)
    if weight is None:
        return u
    out = jax.lax.conv_general_dilated(
        u, weight, window_strides=(1, 1), padding=((1, 1), (1, 1)),
        dimension_numbers=('NCHW', 'OIHW', 'NCHW'),
        preferred_element_type=jnp.float32)
    return (out + bias[None, :, None, None]).astype(x.dtype)


if __name__ == "__main__":
    key = jax.random.PRNGKey(0)
    kx, kup = jax.random.split(key)
    N, C, H, W = 2, 4, 16, 16
    x = jax.random.normal(kx, (N, C, H, W), dtype=jnp.float32)

    # Path 1: use_conv=False (pure nearest 2x upsample; exact).
    up = Upsample(channels=C, use_conv=False)
    y0 = jax.block_until_ready(up(x))
    r0 = _upsample_ref(x)
    assert y0.shape == (N, C, 2 * H, 2 * W)
    assert jnp.allclose(y0, r0, atol=1e-6, rtol=0.0), \
        float(jnp.max(jnp.abs(y0 - r0)))

    # Path 2a: fused upsample + 3x3 conv, f32 MXU operands (tight check of the
    #          sub-pixel algorithm), out_channels != channels.
    up_f32 = Upsample(channels=C, use_conv=True, out_channels=8, key=kup,
                      compute_dtype=jnp.float32)
    y1 = jax.block_until_ready(up_f32(x))
    r1 = _upsample_ref(x, up_f32.weight, up_f32.bias)
    assert y1.shape == (N, 8, 2 * H, 2 * W)
    assert jnp.allclose(y1, r1, atol=5e-3, rtol=5e-3), \
        float(jnp.max(jnp.abs(y1 - r1)))

    # Path 2b: default bf16 MXU operands (f32 accumulation) -- loose check.
    up_bf = Upsample(channels=C, use_conv=True, out_channels=8, key=kup)
    y2 = jax.block_until_ready(up_bf(x))
    assert y2.shape == (N, 8, 2 * H, 2 * W)
    assert jnp.allclose(y2, r1, atol=5e-2, rtol=5e-2), \
        float(jnp.max(jnp.abs(y2 - r1)))

    print("KERNEL_OK")
</pallas_src>

<mosaic_0001>
module attributes {stable_mosaic.version = 11 : i64} {
  func.func @_upsample_kernel(%arg0: i32, %arg1: i32, %arg2: memref<16x64xf32, #tpu.memory_space<vmem>>, %arg3: memref<1x4x16x16xf32, #tpu.memory_space<vmem>>, %arg4: memref<1x4x16x64xf32, #tpu.memory_space<vmem>>) attributes {dimension_semantics = [#tpu.dimension_semantics<parallel>, #tpu.dimension_semantics<parallel>], iteration_bounds = array<i64: 2, 1>, scalar_prefetch = 0 : i64, scratch_operands = 0 : i64, tpu.core_type = #tpu.core_type<tc>, window_params = [{pipeline_mode = #tpu.pipeline_mode<synchronous>, transform_indices = @transform_0, window_bounds = array<i64: 16, 64>}, {transform_indices = @transform_1, window_bounds = array<i64: 1, 4, 16, 16>}, {transform_indices = @transform_2, window_bounds = array<i64: 1, 4, 16, 64>}]} {
    %c0 = arith.constant 0 : index
    %c0_0 = arith.constant 0 : index
    %c0_1 = arith.constant 0 : index
    %c0_2 = arith.constant 0 : index
    %0 = vector.load %arg3[%c0, %c0_0, %c0_1, %c0_2] : memref<1x4x16x16xf32, #tpu.memory_space<vmem>>, vector<1x4x16x16xf32>
    %1 = vector.shape_cast %0 : vector<1x4x16x16xf32> to vector<4x16x16xf32>
    %2 = vector.shape_cast %1 : vector<4x16x16xf32> to vector<64x16xf32>
    %c0_3 = arith.constant 0 : index
    %c0_4 = arith.constant 0 : index
    %3 = vector.load %arg2[%c0_3, %c0_4] : memref<16x64xf32, #tpu.memory_space<vmem>>, vector<16x64xf32>
    %cst = arith.constant dense<0.000000e+00> : vector<64x64xf32>
    %4 = tpu.matmul %2, %3, %cst {dimension_numbers = #tpu.dot_dimension_numbers<[1], [0], [0], [1], [0, 0, 1, 1], [], []>} : vector<64x16xf32>, vector<16x64xf32>, vector<64x64xf32> -> vector<64x64xf32>
    %5 = vector.shape_cast %4 : vector<64x64xf32> to vector<4x16x64xf32>
    %c0_5 = arith.constant 0 : index
    %c0_6 = arith.constant 0 : index
    %c0_7 = arith.constant 0 : index
    %c0_8 = arith.constant 0 : index
    %6 = vector.load %arg4[%c0_5, %c0_6, %c0_7, %c0_8] : memref<1x4x16x64xf32, #tpu.memory_space<vmem>>, vector<1x4x16x64xf32>
    %7 = vector.shape_cast %6 : vector<1x4x16x64xf32> to vector<4x16x64xf32>
    %8 = vector.shape_cast %5 : vector<4x16x64xf32> to vector<1x4x16x64xf32>
    tpu.vector_store %arg4[%c0_5, %c0_6, %c0_7, %c0_8], %8 {strides = array<i32>} : memref<1x4x16x64xf32, #tpu.memory_space<vmem>>, vector<1x4x16x64xf32>,
    return
  }
  func.func @transform_0(%arg0: i32, %arg1: i32) -> (i32, i32) {
    %c0_i32 = arith.constant 0 : i32
    %c0_i32_0 = arith.constant 0 : i32
    %c0_i32_1 = arith.constant 0 : i32
    return %c0_i32, %c0_i32_0 : i32, i32
  }
  func.func @transform_1(%arg0: i32, %arg1: i32) -> (i32, i32, i32, i32) {
    %c0_i32 = arith.constant 0 : i32
    %c0_i32_0 = arith.constant 0 : i32
    %c0_i32_1 = arith.constant 0 : i32
    return %arg0, %arg1, %c0_i32, %c0_i32_0 : i32, i32, i32, i32
  }
  func.func @transform_2(%arg0: i32, %arg1: i32) -> (i32, i32, i32, i32) {
    %c0_i32 = arith.constant 0 : i32
    %c0_i32_0 = arith.constant 0 : i32
    %c0_i32_1 = arith.constant 0 : i32
    return %arg0, %arg1, %c0_i32, %c0_i32_0 : i32, i32, i32, i32
  }
}

</mosaic_0001>

<bundles_post_ra>
// kernel: tpu_custom_call.1
= control target key start
LH: loop header
LB: loop body
LE: loop exit
PB: predicated region body
PF: predicated region fallthrough
CT: control target
= control target key end

     0   :  { %7 = vsyncpa [#allocation3], 0  ;;  %s966_s0 = inlined_call_operand.hbm [shape: f32[16,64], index: 0, kind: input, shape index: {}]   ;;  %s967_s1 = inlined_call_operand.hbm [shape: f32[2,4,16,16], index: 1, kind: input, shape index: {}]   ;;  %s968_s2 = inlined_call_operand.hbm [shape: f32[2,4,16,64], index: 2, kind: output, shape index: {}]  }
   0x1   :  { %8 = vsyncpa [#allocation6], 0 }
   0x2   :  { %10 = vsyncpa [#allocation6 + $0x1], 0 }
   0x3   :  { %11 = vsyncpa [#allocation4], 0 }
   0x4   :  { %13 = vsyncpa [#allocation4 + $0x1], 0  ;;  %s759_s9 = smov 0   ;;  %s761_s10 = smov 0  }
   0x5   :  { %s763_s11 = smov 0   ;;  %s765_s12 = smov 0  }
   0x6   :  { %s767_s13 = smov 0   ;;  %s769_s14 = smov 0  }
   0x7 LB: > { %s463_s15 = sadd.s32 4294967295, %s735_s14   ;;  %s464_s16 = sadd.s32 4294967294, %s735_s14   ;;  %s735_s14 = sphi %s769_s14, %s19_s14   ;;  %s731_s13 = sphi %s767_s13, %s988_s13   ;;  %s727_s12 = sphi %s765_s12, %s987_s12   ;;  %s723_s11 = sphi %s763_s11, %s986_s11   ;;  %s719_s10 = sphi %s761_s10, %s985_s10   ;;  %s715_s9 = sphi %s759_s9, %s984_s9  }
   0x8   : > { %p74_p0 = scmp.ne.s32.totalorder %s719_s10, %s715_s9  ;;  %p793_p1 = scmp.eq.s32.totalorder %s463_s15, 0 }
   0x9   : > { %p797_p2 = scmp.eq.s32.totalorder %s463_s15, 1  ;;  %p106_p3 = scmp.eq.s32.totalorder %s464_s16, 1 }
   0xa   : > { %p803_p4 = por %p793_p1, %p74_p0  ;;  %p465_p5 = scmp.ge.s32.totalorder %s735_s14, 1 }
   0xb   : > { %p808_p6 = por %p106_p3, %p74_p0  ;;  %p113_p7 = scmp.lt.s32.totalorder %s735_s14, 3 }
   0xc   : > { %s973_s19 = scalar_select %p803_p4, 1, 0 }
   0xd   : > { %s974_s20 = scalar_select %p808_p6, 1, 0 }
   0xe   : > { %p813_p8 = pnand %p465_p5, %p113_p7  ;;  %s737_s22 = smov [#allocation2]  }
   0xf   : > { %s125_s23 = sshll.u32 %s737_s22, 4  ;;  %s31_s25 = sadd.s32 1, %s731_s13  ;;  %s126_s23 = int_to_ptr.vmem [resolvable:$true] %s125_s23 }
  0x10   : > { %p528_p9 = pneg %p813_p8  ;;  %s608_s26 = scalar_lea.vmem %s126_s23, 256 }
  0x11   : > { %p609_p13 = scmp.ne.s32.totalorder %s126_s23, %s608_s26  ;;  %p616_p5 = scmp.lt.s32.totalorder %s126_s23, %s126_s23 }
  0x12   : > { %p822_p11 = pnand %p528_p9, %p793_p1  ;;  %p617_p7 = scmp.lt.s32.totalorder %s608_s26, %s608_s26 }
  0x14   : > { %p599_p12 = pneg %p822_p11  ;;  %p618_p6 = por %p617_p7, %p616_p5 }
  0x16   : > { %p611_p0 = pnand %p609_p13, %p599_p12 }
  0x18   : > { %p612_p3 = pneg %p611_p0 }
  0x1a   : > { %p619_p4 = pnand %p618_p6, %p612_p3 }
  0x1c   : > { %622 = shalt.err (!%p619_p4)
}
  0x1d   : > { %s970_s27 = smov 128   ;;  %s739_s28 = smov 8  }
  0x1e   : > { %531 = dma.hbm_to_vmem [thread:$0]  (!%p822_p11), %s966_s0, 256, %s126_s23, [#allocation3], %s970_s27, %s970_s27, %s739_s28  }
  0x1f   : > { %p33_p4 = scmp.ge.s32.totalorder %s31_s25, 2  ;;  %s61_s3 = sadd.s32 1, %s723_s11 }
  0x20   : > { %p68_p6 = scmp.ne.s32.totalorder %s723_s11, %s719_s10  ;;  %p69_p9 = scmp.eq.s32.totalorder %s735_s14, 0 }
  0x21   : > { %s990_s25 = smov (%p33_p4, %s31_s25), 0  ;;  %p541_p0 = scmp.lt.s32.totalorder %s735_s14, 2 }
  0x22   : > { %p843_p12 = por %p69_p9, %p68_p6  ;;  %p849_p13 = por %p797_p2, %p68_p6 }
  0x23   : > { %s56_s6 = ssub.s32 %s731_s13, %s990_s25  ;;  %s139_s7 = sand.u32 1, %s723_s11  }
  0x24   : > { %p59_p11 = scmp.eq.s32.totalorder %s56_s6, 0  ;;  %s468_s8 = sshll.u32 %s139_s7, 6 }
  0x25   : > { %s488_s16 = sshll.u32 %s731_s13, 10  ;;  %s143_s26 = scalar_lea.vmem [#allocation5], %s468_s8 }
  0x26   : > { %s858_s15 = scalar_select %p59_p11, %s723_s11, %s61_s3  }
  0x27   : > { %s152_s24 = scalar_lea.hbm %s967_s1, %s488_s16  ;;  %s153_s29 = sshll.u32 %s143_s26, 4  ;;  %s154_s29 = int_to_ptr.vmem [resolvable:$true] %s153_s29 }
  0x28   : > { %p866_p2 = pnand %p541_p0, %p843_p12  ;;  %s140_s30 = scalar_lea.sflag [#allocation6], %s139_s7 }
  0x29   : > { %s636_s6 = scalar_lea.vmem %s154_s29, 1024  ;;  %s740_s3 = smov [#allocation5]  }
  0x2a   : > { %p625_p3 = pneg %p866_p2  ;;  %p637_p5 = scmp.ne.s32.totalorder %s154_s29, %s636_s6 }
  0x2b   : > { %s641_s27 = sshll.u32 %s740_s3, 4  ;;  %s642_s27 = int_to_ptr.vmem [resolvable:$false] %s641_s27 }
  0x2c   : > { %p639_p7 = pnand %p637_p5, %p625_p3  ;;  %s643_s16 = scalar_lea.vmem %s642_s27, 2048 }
  0x2d   : > { %p644_p6 = scmp.lt.s32.totalorder %s154_s29, %s642_s27  ;;  %p645_p9 = scmp.lt.s32.totalorder %s643_s16, %s636_s6 }
  0x2e   : > { %p640_p4 = pneg %p639_p7 }
  0x2f   : > { %p646_p11 = por %p645_p9, %p644_p6 }
  0x31   : > { %p647_p10 = pnand %p646_p11, %p640_p4 }
  0x33   : > { %650 = shalt.err (!%p647_p10)
}
  0x34   : > { %s980_s4 = smov 128   ;;  %165 = sbr.rel (%p813_p8) target bundleno = 281 (0x119), region = 28 }
  0x35   : > { %535 = dma.hbm_to_vmem [thread:$0]  (!%p866_p2), %s152_s24, 1024, %s154_s29, %s140_s30, %s980_s4, %s980_s4, %s739_s28  }
  0x39   : > { %702 = dma.done.wait (%p793_p1), [#allocation3], 256  }
  0x3a   : > { %704 = vsyncadd (%p793_p1), [#allocation3], 4294967040  ;;  %s884_s27 = sand.u32 1, %s719_s10   ;;  %p981_p10 = scmp.ne.s32.totalorder %s973_s19, 0 }
  0x3b   : > { %s473_s7 = sshll.u32 %s884_s27, 6  ;;  %s172_s8 = scalar_lea.sflag [#allocation6], %s884_s27 }
  0x3c   : > { %s175_s28 = scalar_lea.vmem [#allocation5], %s473_s7 }
  0x3d   : > { %706 = dma.done.wait (%p981_p10), %s172_s8, 1024  }
  0x3e   : > { %708 = vsyncadd (%p981_p10), %s172_s8, 4294966272  ;;  %v207_v0 = vld [vmem:[#allocation2 + $0x8] sm:$0xff]  ;;  %v206_v1 = vld [vmem:[#allocation2] sm:$0xff]  ;;  %vm208_vm0 = vcmask 130048   ;;  %vm338_vm1 = vcmask 523264   ;;  %s195_s17 = scalar_lea.vmem [#allocation7], %s473_s7 }
  0x3f   : > { %500 = vmatprep.subr.mxu0 %v207_v0  ;;  %516 = vmatprep.subr.mxu1 %v207_v0  ;;  %v198_v2 = vld [vmem:[%s175_s28] sm:$0xff]  ;;  %v199_v4 = vld [vmem:[%s175_s28 + $0x8] sm:$0xff]  ;;  %v200_v6 = vld [vmem:[%s175_s28 + $0x10] sm:$0xff]  ;;  %s364_s19 = sshll.u32 %s195_s17, 4  ;;  %s489_s21 = sshll.u32 %s727_s12, 10  ;;  %s907_s19 = int_to_ptr.vmem [resolvable:$true] %s364_s19 }
  0x40   : > { %501 = vmatpush3.msra.mxu0 %v207_v0  ;;  %518 = vmatpush3.msra.mxu1 %v207_v0  ;;  %v202_v3 = vld [vmem:[%s175_s28 + $0x20] sm:$0xff]  ;;  %v203_v5 = vld [vmem:[%s175_s28 + $0x28] sm:$0xff]  ;;  %v204_v7 = vld [vmem:[%s175_s28 + $0x30] sm:$0xff]  ;;  %s914_s24 = scalar_lea.hbm %s968_s2, %s489_s21  ;;  %s348_s12 = scalar_lea.sflag [#allocation4], %s884_s27 }
  0x41   : > { %502 = vmatprep.subr.mxu0 %v206_v1  ;;  %517 = vmatprep.subr.mxu1 %v206_v1  ;;  %v201_v8 = vld [vmem:[%s175_s28 + $0x18] sm:$0xff]  ;;  %s651_s26 = scalar_lea.vmem %s907_s19, 1024  ;;  %s741_s29 = smov [#allocation7]  }
  0x42   : > { %503 = vmatpush3.msra.mxu0 %v206_v1  ;;  %519 = vmatpush3.msra.mxu1 %v206_v1  ;;  %v205_v9 = vld [vmem:[%s175_s28 + $0x38] sm:$0xff]  ;;  %p652_p1 = scmp.ne.s32.totalorder %s907_s19, %s651_s26  ;;  %s655_s18 = sshll.u32 %s741_s29, 4  ;;  %s656_s18 = int_to_ptr.vmem [resolvable:$false] %s655_s18 }
  0x43   : > { %504 = vmatprep.mubr.msk.f32.mxu0 %vm208_vm0, %v198_v2  ;;  %510 = vmatprep.mubr.msk.f32.mxu1 %vm208_vm0, %v202_v3  ;;  %s657_s30 = scalar_lea.vmem %s656_s18, 2048  ;;  %p658_p0 = scmp.lt.s32.totalorder %s907_s19, %s656_s18 }
  0x44   : > { %505 = vmatmul.mubr.msk.f32.vlgmr.msra.gmra.mxu0 %vm208_vm0, %v199_v4  ;;  %511 = vmatmul.mubr.msk.f32.vlgmr.msra.gmra.mxu1 %vm208_vm0, %v203_v5  ;;  %p653_p8 = pnand %p652_p1, %p849_p13  ;;  %p659_p2 = scmp.lt.s32.totalorder %s657_s30, %s651_s26 }
  0x45   : > { %507 = vmatprep.mubr.msk.f32.mxu0 %vm208_vm0, %v200_v6  ;;  %513 = vmatprep.mubr.msk.f32.mxu1 %vm208_vm0, %v204_v7 }
  0x46   : > { %p654_p12 = pneg %p653_p8  ;;  %p660_p3 = por %p659_p2, %p658_p0 }
  0x48   : > { %508 = vmatmul.mubr.msk.f32.gmra.mxu0 %vm208_vm0, %v201_v8  ;;  %514 = vmatmul.mubr.msk.f32.gmra.mxu1 %vm208_vm0, %v205_v9  ;;  %p661_p5 = pnand %p660_p3, %p654_p12 }
 0x104   : > { %v506_v10 = vpop.f32.mrf.mxu0  ;;  %v512_v11 = vpop.f32.mrf.mxu1 }
 0x105   : > { %340 = vst.msk [vmem:[%s195_s17 + $0x8] sm:$0xff] %vm338_vm1, %v506_v10  ;;  %344 = vst.msk [vmem:[%s195_s17 + $0x28] sm:$0xff] %vm338_vm1, %v512_v11 }
 0x106   : > { %v299_v12 = vpop.f32.mrf.mxu0  ;;  %v319_v13 = vpop.f32.mrf.mxu1 }
 0x107   : > { %339 = vst.msk [vmem:[%s195_s17] sm:$0xff] %vm338_vm1, %v299_v12  ;;  %343 = vst.msk [vmem:[%s195_s17 + $0x20] sm:$0xff] %vm338_vm1, %v319_v13 }
 0x108   : > { %v509_v14 = vpop.f32.mrf.mxu0  ;;  %v515_v15 = vpop.f32.mrf.mxu1 }
 0x109   : > { %342 = vst.msk [vmem:[%s195_s17 + $0x18] sm:$0xff] %vm338_vm1, %v509_v14  ;;  %346 = vst.msk [vmem:[%s195_s17 + $0x38] sm:$0xff] %vm338_vm1, %v515_v15 }
 0x10a   : > { %v309_v16 = vpop.f32.mrf.mxu0  ;;  %v329_v17 = vpop.f32.mrf.mxu1 }
 0x10b   : > { %341 = vst.msk [vmem:[%s195_s17 + $0x10] sm:$0xff] %vm338_vm1, %v309_v16  ;;  %345 = vst.msk [vmem:[%s195_s17 + $0x30] sm:$0xff] %vm338_vm1, %v329_v17 }
 0x10c   : > { %664 = shalt.err (!%p661_p5)
}
 0x10d   : > { %s665_s6 = scalar_lea.hbm %s914_s24, 1024  ;;  %s669_s4 = scalar_lea.hbm %s968_s2, 2048 }
 0x10e   : > { %p666_p7 = scmp.ne.s32.totalorder %s914_s24, %s665_s6  ;;  %p670_p9 = scmp.lt.s32.totalorder %s914_s24, %s968_s2 }
 0x10f   : > { %p671_p11 = scmp.lt.s32.totalorder %s669_s4, %s665_s6 }
 0x110   : > { %p667_p4 = pnand %p666_p7, %p849_p13 }
 0x111   : > { %p672_p10 = por %p671_p11, %p670_p9 }
 0x112   : > { %p668_p6 = pneg %p667_p4 }
 0x114   : > { %p673_p1 = pnand %p672_p10, %p668_p6 }
 0x116   : > { %676 = shalt.err (!%p673_p1)
}
 0x117   : > { %s742_s28 = smov 128   ;;  %s743_s17 = smov 8  }
 0x118   : > { %526 = dma.vmem_to_hbm [thread:$0]  (%p849_p13), %s907_s19, 1024, %s914_s24, %s348_s12, %s742_s28, %s742_s28, %s743_s17  }
 0x119 PF: > { %s379_s21 = sand.u32 1, %s715_s9   ;;  %p982_p8 = scmp.ne.s32.totalorder %s974_s20, 0 }
 0x11a   : > { %p983_p12 = scmp.ge.s32.totalorder %s735_s14, 2  ;;  %s380_s22 = scalar_lea.sflag [#allocation4], %s379_s21 }
 0x11c   : > { %p537_p0 = pnand %p983_p12, %p982_p8 }
 0x11e   : > { %p538_p2 = pneg %p537_p0 }
 0x120   : > { %710 = dma.done.wait (%p538_p2), %s380_s22, 1024  }
 0x121   : > { %712 = vsyncadd (%p538_p2), %s380_s22, 4294966272  ;;  %s19_s14 = sadd.s32 1, %s735_s14   ;;  %s984_s9 = smov %s719_s10 }
 0x122   : > { %p16_p3 = scmp.ge.s32.totalorder %s19_s14, 4   ;;  %s985_s10 = smov %s723_s11 }
 0x123   : > { %s986_s11 = smov %s858_s15  ;;  %s987_s12 = smov %s731_s13 }
 0x124   : > { %s988_s13 = smov %s990_s25  ;;  %18 = sbr.rel (!%p16_p3) target bundleno = 7 (0x7), region = 78 }
 0x129   :  { %385 = vsyncpa [#allocation3], 1 }
 0x12a   :  { %387 = vsyncpa [#allocation3 + $0x1], 1 }
 0x12b   :  { %388 = vsyncpa [#allocation6], 1 }
 0x12c   :  { %390 = vsyncpa [#allocation6 + $0x1], 1 }
 0x12d   :  { %391 = vsyncpa [#allocation4], 1 }
 0x12e   :  { %393 = vsyncpa [#allocation4 + $0x1], 1 }

</bundles_post_ra>
